<compile_context>
chip_gen: v6e
topology: v6e:2x2x1
jax: 0.10.0
libtpu: 0.0.40
codegen_flags: <defaults>
</compile_context>

<pallas_src>
import math

import jax
import jax.numpy as jnp
from jax.experimental import pallas as pl
from jax.experimental.pallas import tpu as pltpu


def _round_up(x, m):
    return ((x + m - 1) // m) * m


def _cdiv(a, b):
    return (a + b - 1) // b


# ---------------------------------------------------------------------------
# Single fused kernel: Q/K/V projections + attention core + output projection.
# Gridded over batch tiles; all weights stay resident in VMEM and the
# intermediates (qp/kp/vp, scores, softmax weights) never touch HBM.
# ---------------------------------------------------------------------------
def _mha_fused_kernel(q_ref, k_ref, v_ref,
                      wq_ref, bq_ref, wk_ref, bk_ref, wv_ref, bv_ref,
                      sel_ref, selt_ref, wo_ref, bo_ref,
                      o_ref):
    dt = q_ref.dtype                       # compute dtype (bf16 stays bf16 on the MXU)
    bt, l_k, d_model = k_ref.shape
    hidden = wq_ref.shape[1]
    hp = sel_ref.shape[1]                  # lane-dense padded head axis (>= 128)
    rows = bt * l_k

    # ---- fused Q/K/V projections: native-dtype operands, f32 MXU accumulate ----
    q2 = q_ref[...].reshape(bt, d_model)                       # L_q == 1
    qp = (jnp.dot(q2, wq_ref[...], preferred_element_type=jnp.float32)
          + bq_ref[...]).astype(dt)                            # (bt, hidden)
    k2 = k_ref[...].reshape(rows, d_model)
    kp = (jnp.dot(k2, wk_ref[...], preferred_element_type=jnp.float32)
          + bk_ref[...]).astype(dt)                            # (rows, hidden)
    v2 = v_ref[...].reshape(rows, d_model)
    vp = (jnp.dot(v2, wv_ref[...], preferred_element_type=jnp.float32)
          + bv_ref[...]).astype(dt)                            # (rows, hidden)

    # ---- per-head scores q.k / sqrt(d_k): elementwise q*k, then segment-sum over
    #      each head's d_k columns via the 0/1 selector (scale pre-folded into sel) ----
    t = qp.reshape(bt, 1, hidden) * kp.reshape(bt, l_k, hidden)
    scores = jnp.dot(t.reshape(rows, hidden), sel_ref[...],
                     preferred_element_type=jnp.float32)       # (rows, hp) f32
    s3 = scores.reshape(bt, l_k, hp)

    # ---- softmax over the key axis, independently per batch & head column ----
    m = jnp.max(s3, axis=1, keepdims=True)
    e = jnp.exp(s3 - m)
    denom = jnp.sum(e, axis=1, keepdims=True)
    w = e * pl.reciprocal(denom, approx=True)                  # (bt, l_k, hp) f32

    # ---- transpose + repeat(d_k): broadcast each head's weight across its d_k
    #      columns via the transposed selector, then apply elementwise to V ----
    w_full = jnp.dot(w.reshape(rows, hp).astype(dt), selt_ref[...],
                     preferred_element_type=jnp.float32).astype(dt)   # (rows, hidden)
    # TODO(synk): nn.Dropout(p) on the attention weights is train-mode stochastic;
    # eval-mode (identity) semantics are implemented here.
    weighted = w_full * vp                                     # == "concat", (rows, hidden)

    # ---- output projection ----
    out = jnp.dot(weighted, wo_ref[...],
                  preferred_element_type=jnp.float32) + bo_ref[...]   # (rows, d_model)
    o_ref[...] = out.reshape(bt, l_k, d_model).astype(o_ref.dtype)


def _pick_b_tile(bs, l_k):
    """Batch tile so each grid step feeds ~256 rows to the MXU, while keeping at
    least 2 parallel grid steps when possible (v7x has 2 TensorCores)."""
    bt = max(1, min(bs, _cdiv(256, max(l_k, 1))))
    if bs >= 2:
        bt = min(bt, _cdiv(bs, 2))
    return bt


def _vmem_limit_bytes(bt, l_k, d_model, hidden, hp, itemsize):
    rows = bt * l_k
    blocks = (bt * d_model + 2 * rows * d_model            # q, k, v blocks
              + 3 * (d_model * hidden + hidden)            # wq/wk/wv + biases
              + hidden * hp + hp * hidden                  # selector matrices
              + hidden * d_model + d_model                 # wo, bo
              + rows * d_model)                            # output block
    inter = rows * (3 * hidden + 2 * hp + d_model) * 4     # f32 intermediates
    est = 2 * blocks * itemsize + inter + (4 << 20)        # double-buffered + margin
    # Raise v5e's 16 MiB scoped default; stay under v7x's 64 MiB physical VMEM.
    return int(min(56 << 20, max(32 << 20, est)))


def mh_attn_forward(q, k, v, wq, bq, wk, bk, wv, bv, wo, bo, *, heads):
    """MHAttn.forward(q, k, v, mask=None) in eval mode.

    Weights are stored as (d_in, d_out), i.e. the transpose of nn.Linear.weight.
    """
    bs, l_q, d_model = q.shape
    _, l_k, _ = k.shape
    hidden = wq.shape[1]
    d_k = hidden // heads
    # The PyTorch module's `scores * v` broadcast only works for a length-1 query.
    assert l_q == 1, "MHAttn semantics require query length 1"
    # TODO(synk): optional boolean `mask` argument not implemented (forward uses mask=None).

    dt = q.dtype
    scale = 1.0 / math.sqrt(d_k)
    hp = _round_up(heads, 128)       # lane-dense head axis; padded columns are no-ops

    head_ids = jnp.arange(hidden) // d_k
    # (hidden, hp) head selector with the 1/sqrt(d_k) scale folded in; the padded
    # head columns are all-zero and are killed again by the zero rows of sel_t.
    sel = jnp.where(head_ids[:, None] == jnp.arange(hp)[None, :], scale, 0.0).astype(dt)
    sel_t = jnp.where(jnp.arange(hp)[:, None] == head_ids[None, :], 1.0, 0.0).astype(dt)

    bt = _pick_b_tile(bs, l_k)
    bs_p = _round_up(bs, bt)
    if bs_p != bs:
        pad = ((0, bs_p - bs), (0, 0), (0, 0))
        q = jnp.pad(q, pad)
        k = jnp.pad(k, pad)
        v = jnp.pad(v, pad)

    vmem_limit = _vmem_limit_bytes(bt, l_k, d_model, hidden, hp,
                                   jnp.dtype(dt).itemsize)

    # TODO(synk): very long l_k / very large d_model would additionally need key-axis
    # and d_in tiling (flash-style online softmax + K-accumulator) to fit v7x's VMEM.
    out = pl.pallas_call(
        _mha_fused_kernel,
        out_shape=jax.ShapeDtypeStruct((bs_p, l_k, d_model), dt),
        grid_spec=pltpu.PrefetchScalarGridSpec(
            num_scalar_prefetch=0,
            grid=(bs_p // bt,),
            in_specs=[
                pl.BlockSpec((bt, 1, d_model), lambda b: (b, 0, 0)),     # q
                pl.BlockSpec((bt, l_k, d_model), lambda b: (b, 0, 0)),   # k
                pl.BlockSpec((bt, l_k, d_model), lambda b: (b, 0, 0)),   # v
                pl.BlockSpec((d_model, hidden), lambda b: (0, 0)),       # wq (resident)
                pl.BlockSpec((1, hidden), lambda b: (0, 0)),             # bq
                pl.BlockSpec((d_model, hidden), lambda b: (0, 0)),       # wk
                pl.BlockSpec((1, hidden), lambda b: (0, 0)),             # bk
                pl.BlockSpec((d_model, hidden), lambda b: (0, 0)),       # wv
                pl.BlockSpec((1, hidden), lambda b: (0, 0)),             # bv
                pl.BlockSpec((hidden, hp), lambda b: (0, 0)),            # sel
                pl.BlockSpec((hp, hidden), lambda b: (0, 0)),            # sel_t
                pl.BlockSpec((hidden, d_model), lambda b: (0, 0)),       # wo
                pl.BlockSpec((1, d_model), lambda b: (0, 0)),            # bo
            ],
            out_specs=pl.BlockSpec((bt, l_k, d_model), lambda b: (b, 0, 0)),
        ),
        compiler_params=pltpu.CompilerParams(
            dimension_semantics=("parallel",),
            vmem_limit_bytes=vmem_limit),
    )(q, k, v,
      wq, bq.reshape(1, hidden), wk, bk.reshape(1, hidden),
      wv, bv.reshape(1, hidden), sel, sel_t, wo, bo.reshape(1, d_model))
    return out[:bs]


if __name__ == "__main__":
    bs, l_q, l_k = 4, 1, 8
    d_model, hidden, heads = 128, 128, 4
    d_k = hidden // heads

    key = jax.random.PRNGKey(0)
    ks = jax.random.split(key, 11)
    q = jax.random.normal(ks[0], (bs, l_q, d_model), jnp.float32)
    k = jax.random.normal(ks[1], (bs, l_k, d_model), jnp.float32)
    v = jax.random.normal(ks[2], (bs, l_k, d_model), jnp.float32)

    def init_linear(kw, kb, d_in, d_out):
        bound = 1.0 / (d_in ** 0.5)
        w = jax.random.uniform(kw, (d_in, d_out), jnp.float32, -bound, bound)
        b = jax.random.uniform(kb, (d_out,), jnp.float32, -bound, bound)
        return w, b

    wq, bq = init_linear(ks[3], ks[4], d_model, hidden)
    wk, bk = init_linear(ks[5], ks[6], d_model, hidden)
    wv, bv = init_linear(ks[7], ks[8], d_model, hidden)
    wo, bo = init_linear(ks[9], ks[10], hidden, d_model)

    out = mh_attn_forward(q, k, v, wq, bq, wk, bk, wv, bv, wo, bo, heads=heads)
    jax.block_until_ready(out)

    # Pure-JAX reference reproducing the PyTorch module exactly (eval mode, mask=None).
    HI = jax.lax.Precision.HIGHEST
    Q = jnp.einsum("bld,dh->blh", q, wq, precision=HI) + bq
    K = jnp.einsum("bld,dh->blh", k, wk, precision=HI) + bk
    V = jnp.einsum("bld,dh->blh", v, wv, precision=HI) + bv
    Qh = Q.reshape(bs, l_q, heads, d_k).transpose(0, 2, 1, 3)
    Kh = K.reshape(bs, l_k, heads, d_k).transpose(0, 2, 1, 3)
    Vh = V.reshape(bs, l_k, heads, d_k).transpose(0, 2, 1, 3)
    scores = jnp.einsum("bhqd,bhkd->bhqk", Qh, Kh, precision=HI) / (d_k ** 0.5)
    scores = jax.nn.softmax(scores, axis=-1)
    scores = jnp.swapaxes(scores, -2, -1)           # (bs, h, L_k, L_q)
    scores = jnp.tile(scores, (1, 1, 1, d_k))       # repeat(1,1,1,d_k)
    out_h = scores * Vh                             # elementwise (requires L_q == 1)
    concat = out_h.transpose(0, 2, 1, 3).reshape(bs, l_k, heads * d_k)
    ref = jnp.einsum("blh,hd->bld", concat, wo, precision=HI) + bo

    assert out.shape == (bs, l_k, d_model)
    max_err = float(jnp.max(jnp.abs(out - ref)))
    assert jnp.allclose(out, ref, atol=2e-3, rtol=2e-3), max_err

    print("KERNEL_OK")
</pallas_src>

<mosaic_0001>
module attributes {stable_mosaic.version = 11 : i64} {
  func.func @_mha_fused_kernel(%arg0: i32, %arg1: memref<2x1x128xf32, #tpu.memory_space<vmem>>, %arg2: memref<2x8x128xf32, #tpu.memory_space<vmem>>, %arg3: memref<2x8x128xf32, #tpu.memory_space<vmem>>, %arg4: memref<128x128xf32, #tpu.memory_space<vmem>>, %arg5: memref<1x128xf32, #tpu.memory_space<vmem>>, %arg6: memref<128x128xf32, #tpu.memory_space<vmem>>, %arg7: memref<1x128xf32, #tpu.memory_space<vmem>>, %arg8: memref<128x128xf32, #tpu.memory_space<vmem>>, %arg9: memref<1x128xf32, #tpu.memory_space<vmem>>, %arg10: memref<128x128xf32, #tpu.memory_space<vmem>>, %arg11: memref<128x128xf32, #tpu.memory_space<vmem>>, %arg12: memref<128x128xf32, #tpu.memory_space<vmem>>, %arg13: memref<1x128xf32, #tpu.memory_space<vmem>>, %arg14: memref<2x8x128xf32, #tpu.memory_space<vmem>>) attributes {dimension_semantics = [#tpu.dimension_semantics<parallel>], iteration_bounds = array<i64: 2>, scalar_prefetch = 0 : i64, scratch_operands = 0 : i64, tpu.core_type = #tpu.core_type<tc>, window_params = [{transform_indices = @transform_0, window_bounds = array<i64: 2, 1, 128>}, {transform_indices = @transform_1, window_bounds = array<i64: 2, 8, 128>}, {transform_indices = @transform_2, window_bounds = array<i64: 2, 8, 128>}, {pipeline_mode = #tpu.pipeline_mode<synchronous>, transform_indices = @transform_3, window_bounds = array<i64: 128, 128>}, {pipeline_mode = #tpu.pipeline_mode<synchronous>, transform_indices = @transform_4, window_bounds = array<i64: 1, 128>}, {pipeline_mode = #tpu.pipeline_mode<synchronous>, transform_indices = @transform_5, window_bounds = array<i64: 128, 128>}, {pipeline_mode = #tpu.pipeline_mode<synchronous>, transform_indices = @transform_6, window_bounds = array<i64: 1, 128>}, {pipeline_mode = #tpu.pipeline_mode<synchronous>, transform_indices = @transform_7, window_bounds = array<i64: 128, 128>}, {pipeline_mode = #tpu.pipeline_mode<synchronous>, transform_indices = @transform_8, window_bounds = array<i64: 1, 128>}, {pipeline_mode = #tpu.pipeline_mode<synchronous>, transform_indices = @transform_9, window_bounds = array<i64: 128, 128>}, {pipeline_mode = #tpu.pipeline_mode<synchronous>, transform_indices = @transform_10, window_bounds = array<i64: 128, 128>}, {pipeline_mode = #tpu.pipeline_mode<synchronous>, transform_indices = @transform_11, window_bounds = array<i64: 128, 128>}, {pipeline_mode = #tpu.pipeline_mode<synchronous>, transform_indices = @transform_12, window_bounds = array<i64: 1, 128>}, {transform_indices = @transform_13, window_bounds = array<i64: 2, 8, 128>}]} {
    %c0 = arith.constant 0 : index
    %c0_0 = arith.constant 0 : index
    %c0_1 = arith.constant 0 : index
    %0 = vector.load %arg1[%c0, %c0_0, %c0_1] : memref<2x1x128xf32, #tpu.memory_space<vmem>>, vector<2x1x128xf32>
    %1 = vector.shape_cast %0 : vector<2x1x128xf32> to vector<2x128xf32>
    %c0_2 = arith.constant 0 : index
    %c0_3 = arith.constant 0 : index
    %2 = vector.load %arg4[%c0_2, %c0_3] : memref<128x128xf32, #tpu.memory_space<vmem>>, vector<128x128xf32>
    %cst = arith.constant dense<0.000000e+00> : vector<2x128xf32>
    %3 = tpu.matmul %1, %2, %cst {dimension_numbers = #tpu.dot_dimension_numbers<[1], [0], [0], [1], [0, 0, 1, 1], [], []>} : vector<2x128xf32>, vector<128x128xf32>, vector<2x128xf32> -> vector<2x128xf32>
    %c0_4 = arith.constant 0 : index
    %c0_5 = arith.constant 0 : index
    %4 = vector.load %arg5[%c0_4, %c0_5] : memref<1x128xf32, #tpu.memory_space<vmem>>, vector<1x128xf32>
    %5 = vector.broadcast %4 : vector<1x128xf32> to vector<2x128xf32>
    %6 = arith.addf %3, %5 : vector<2x128xf32>
    %c0_6 = arith.constant 0 : index
    %c0_7 = arith.constant 0 : index
    %c0_8 = arith.constant 0 : index
    %7 = vector.load %arg2[%c0_6, %c0_7, %c0_8] : memref<2x8x128xf32, #tpu.memory_space<vmem>>, vector<2x8x128xf32>
    %8 = vector.shape_cast %7 : vector<2x8x128xf32> to vector<16x128xf32>
    %c0_9 = arith.constant 0 : index
    %c0_10 = arith.constant 0 : index
    %9 = vector.load %arg6[%c0_9, %c0_10] : memref<128x128xf32, #tpu.memory_space<vmem>>, vector<128x128xf32>
    %cst_11 = arith.constant dense<0.000000e+00> : vector<16x128xf32>
    %10 = tpu.matmul %8, %9, %cst_11 {dimension_numbers = #tpu.dot_dimension_numbers<[1], [0], [0], [1], [0, 0, 1, 1], [], []>} : vector<16x128xf32>, vector<128x128xf32>, vector<16x128xf32> -> vector<16x128xf32>
    %c0_12 = arith.constant 0 : index
    %c0_13 = arith.constant 0 : index
    %11 = vector.load %arg7[%c0_12, %c0_13] : memref<1x128xf32, #tpu.memory_space<vmem>>, vector<1x128xf32>
    %12 = vector.broadcast %11 : vector<1x128xf32> to vector<16x128xf32>
    %13 = arith.addf %10, %12 : vector<16x128xf32>
    %c0_14 = arith.constant 0 : index
    %c0_15 = arith.constant 0 : index
    %c0_16 = arith.constant 0 : index
    %14 = vector.load %arg3[%c0_14, %c0_15, %c0_16] : memref<2x8x128xf32, #tpu.memory_space<vmem>>, vector<2x8x128xf32>
    %15 = vector.shape_cast %14 : vector<2x8x128xf32> to vector<16x128xf32>
    %c0_17 = arith.constant 0 : index
    %c0_18 = arith.constant 0 : index
    %16 = vector.load %arg8[%c0_17, %c0_18] : memref<128x128xf32, #tpu.memory_space<vmem>>, vector<128x128xf32>
    %cst_19 = arith.constant dense<0.000000e+00> : vector<16x128xf32>
    %17 = tpu.matmul %15, %16, %cst_19 {dimension_numbers = #tpu.dot_dimension_numbers<[1], [0], [0], [1], [0, 0, 1, 1], [], []>} : vector<16x128xf32>, vector<128x128xf32>, vector<16x128xf32> -> vector<16x128xf32>
    %c0_20 = arith.constant 0 : index
    %c0_21 = arith.constant 0 : index
    %18 = vector.load %arg9[%c0_20, %c0_21] : memref<1x128xf32, #tpu.memory_space<vmem>>, vector<1x128xf32>
    %19 = vector.broadcast %18 : vector<1x128xf32> to vector<16x128xf32>
    %20 = arith.addf %17, %19 : vector<16x128xf32>
    %21 = vector.shape_cast %6 : vector<2x128xf32> to vector<2x1x128xf32>
    %22 = vector.shape_cast %13 : vector<16x128xf32> to vector<2x8x128xf32>
    %23 = vector.broadcast %21 : vector<2x1x128xf32> to vector<2x8x128xf32>
    %24 = arith.mulf %23, %22 : vector<2x8x128xf32>
    %25 = vector.shape_cast %24 : vector<2x8x128xf32> to vector<16x128xf32>
    %c0_22 = arith.constant 0 : index
    %c0_23 = arith.constant 0 : index
    %26 = vector.load %arg10[%c0_22, %c0_23] : memref<128x128xf32, #tpu.memory_space<vmem>>, vector<128x128xf32>
    %cst_24 = arith.constant dense<0.000000e+00> : vector<16x128xf32>
    %27 = tpu.matmul %25, %26, %cst_24 {dimension_numbers = #tpu.dot_dimension_numbers<[1], [0], [0], [1], [0, 0, 1, 1], [], []>} : vector<16x128xf32>, vector<128x128xf32>, vector<16x128xf32> -> vector<16x128xf32>
    %28 = vector.shape_cast %27 : vector<16x128xf32> to vector<2x8x128xf32>
    %cst_25 = arith.constant dense<0xFF800000> : vector<2x128xf32>
    %29 = vector.multi_reduction <maximumf>, %28, %cst_25 [1] : vector<2x8x128xf32> to vector<2x128xf32>
    %30 = vector.shape_cast %29 : vector<2x128xf32> to vector<2x1x128xf32>
    %31 = vector.broadcast %30 : vector<2x1x128xf32> to vector<2x8x128xf32>
    %32 = arith.subf %28, %31 : vector<2x8x128xf32>
    %33 = math.exp %32 : vector<2x8x128xf32>
    %cst_26 = arith.constant dense<0.000000e+00> : vector<2x128xf32>
    %34 = vector.multi_reduction <add>, %33, %cst_26 [1] : vector<2x8x128xf32> to vector<2x128xf32>
    %35 = vector.shape_cast %34 : vector<2x128xf32> to vector<2x1x128xf32>
    %36 = tpu.reciprocal %35 {approx = true} : vector<2x1x128xf32> -> vector<2x1x128xf32>
    %37 = vector.broadcast %36 : vector<2x1x128xf32> to vector<2x8x128xf32>
    %38 = arith.mulf %33, %37 : vector<2x8x128xf32>
    %39 = vector.shape_cast %38 : vector<2x8x128xf32> to vector<16x128xf32>
    %c0_27 = arith.constant 0 : index
    %c0_28 = arith.constant 0 : index
    %40 = vector.load %arg11[%c0_27, %c0_28] : memref<128x128xf32, #tpu.memory_space<vmem>>, vector<128x128xf32>
    %cst_29 = arith.constant dense<0.000000e+00> : vector<16x128xf32>
    %41 = tpu.matmul %39, %40, %cst_29 {dimension_numbers = #tpu.dot_dimension_numbers<[1], [0], [0], [1], [0, 0, 1, 1], [], []>} : vector<16x128xf32>, vector<128x128xf32>, vector<16x128xf32> -> vector<16x128xf32>
    %42 = arith.mulf %41, %20 : vector<16x128xf32>
    %c0_30 = arith.constant 0 : index
    %c0_31 = arith.constant 0 : index
    %43 = vector.load %arg12[%c0_30, %c0_31] : memref<128x128xf32, #tpu.memory_space<vmem>>, vector<128x128xf32>
    %cst_32 = arith.constant dense<0.000000e+00> : vector<16x128xf32>
    %44 = tpu.matmul %42, %43, %cst_32 {dimension_numbers = #tpu.dot_dimension_numbers<[1], [0], [0], [1], [0, 0, 1, 1], [], []>} : vector<16x128xf32>, vector<128x128xf32>, vector<16x128xf32> -> vector<16x128xf32>
    %c0_33 = arith.constant 0 : index
    %c0_34 = arith.constant 0 : index
    %45 = vector.load %arg13[%c0_33, %c0_34] : memref<1x128xf32, #tpu.memory_space<vmem>>, vector<1x128xf32>
    %46 = vector.broadcast %45 : vector<1x128xf32> to vector<16x128xf32>
    %47 = arith.addf %44, %46 : vector<16x128xf32>
    %48 = vector.shape_cast %47 : vector<16x128xf32> to vector<2x8x128xf32>
    %c0_35 = arith.constant 0 : index
    %c0_36 = arith.constant 0 : index
    %c0_37 = arith.constant 0 : index
    %49 = vector.load %arg14[%c0_35, %c0_36, %c0_37] : memref<2x8x128xf32, #tpu.memory_space<vmem>>, vector<2x8x128xf32>
    tpu.vector_store %arg14[%c0_35, %c0_36, %c0_37], %48 {strides = array<i32>} : memref<2x8x128xf32, #tpu.memory_space<vmem>>, vector<2x8x128xf32>,
    return
  }
  func.func @transform_0(%arg0: i32) -> (i32, i32, i32) {
    %c0_i32 = arith.constant 0 : i32
    %c0_i32_0 = arith.constant 0 : i32
    %c0_i32_1 = arith.constant 0 : i32
    return %arg0, %c0_i32, %c0_i32_0 : i32, i32, i32
  }
  func.func @transform_1(%arg0: i32) -> (i32, i32, i32) {
    %c0_i32 = arith.constant 0 : i32
    %c0_i32_0 = arith.constant 0 : i32
    %c0_i32_1 = arith.constant 0 : i32
    return %arg0, %c0_i32, %c0_i32_0 : i32, i32, i32
  }
  func.func @transform_2(%arg0: i32) -> (i32, i32, i32) {
    %c0_i32 = arith.constant 0 : i32
    %c0_i32_0 = arith.constant 0 : i32
    %c0_i32_1 = arith.constant 0 : i32
    return %arg0, %c0_i32, %c0_i32_0 : i32, i32, i32
  }
  func.func @transform_3(%arg0: i32) -> (i32, i32) {
    %c0_i32 = arith.constant 0 : i32
    %c0_i32_0 = arith.constant 0 : i32
    %c0_i32_1 = arith.constant 0 : i32
    return %c0_i32, %c0_i32_0 : i32, i32
  }
  func.func @transform_4(%arg0: i32) -> (i32, i32) {
    %c0_i32 = arith.constant 0 : i32
    %c0_i32_0 = arith.constant 0 : i32
    %c0_i32_1 = arith.constant 0 : i32
    return %c0_i32, %c0_i32_0 : i32, i32
  }
  func.func @transform_5(%arg0: i32) -> (i32, i32) {
    %c0_i32 = arith.constant 0 : i32
    %c0_i32_0 = arith.constant 0 : i32
    %c0_i32_1 = arith.constant 0 : i32
    return %c0_i32, %c0_i32_0 : i32, i32
  }
  func.func @transform_6(%arg0: i32) -> (i32, i32) {
    %c0_i32 = arith.constant 0 : i32
    %c0_i32_0 = arith.constant 0 : i32
    %c0_i32_1 = arith.constant 0 : i32
    return %c0_i32, %c0_i32_0 : i32, i32
  }
  func.func @transform_7(%arg0: i32) -> (i32, i32) {
    %c0_i32 = arith.constant 0 : i32
    %c0_i32_0 = arith.constant 0 : i32
    %c0_i32_1 = arith.constant 0 : i32
    return %c0_i32, %c0_i32_0 : i32, i32
  }
  func.func @transform_8(%arg0: i32) -> (i32, i32) {
    %c0_i32 = arith.constant 0 : i32
    %c0_i32_0 = arith.constant 0 : i32
    %c0_i32_1 = arith.constant 0 : i32
    return %c0_i32, %c0_i32_0 : i32, i32
  }
  func.func @transform_9(%arg0: i32) -> (i32, i32) {
    %c0_i32 = arith.constant 0 : i32
    %c0_i32_0 = arith.constant 0 : i32
    %c0_i32_1 = arith.constant 0 : i32
    return %c0_i32, %c0_i32_0 : i32, i32
  }
  func.func @transform_10(%arg0: i32) -> (i32, i32) {
    %c0_i32 = arith.constant 0 : i32
    %c0_i32_0 = arith.constant 0 : i32
    %c0_i32_1 = arith.constant 0 : i32
    return %c0_i32, %c0_i32_0 : i32, i32
  }
  func.func @transform_11(%arg0: i32) -> (i32, i32) {
    %c0_i32 = arith.constant 0 : i32
    %c0_i32_0 = arith.constant 0 : i32
    %c0_i32_1 = arith.constant 0 : i32
    return %c0_i32, %c0_i32_0 : i32, i32
  }
  func.func @transform_12(%arg0: i32) -> (i32, i32) {
    %c0_i32 = arith.constant 0 : i32
    %c0_i32_0 = arith.constant 0 : i32
    %c0_i32_1 = arith.constant 0 : i32
    return %c0_i32, %c0_i32_0 : i32, i32
  }
  func.func @transform_13(%arg0: i32) -> (i32, i32, i32) {
    %c0_i32 = arith.constant 0 : i32
    %c0_i32_0 = arith.constant 0 : i32
    %c0_i32_1 = arith.constant 0 : i32
    return %arg0, %c0_i32, %c0_i32_0 : i32, i32, i32
  }
}

</mosaic_0001>

<bundles_post_ra>
// kernel: tpu_custom_call.1
= control target key start
LH: loop header
LB: loop body
LE: loop exit
PB: predicated region body
PF: predicated region fallthrough
CT: control target
= control target key end

     0   :  { %s2789_s0 = inlined_call_operand.hbm [shape: f32[4,1,128], index: 0, kind: input, shape index: {}]   ;;  %s2790_s1 = inlined_call_operand.hbm [shape: f32[4,8,128], index: 1, kind: input, shape index: {}]   ;;  %s2791_s2 = inlined_call_operand.hbm [shape: f32[4,8,128], index: 2, kind: input, shape index: {}]   ;;  %s2792_s3 = inlined_call_operand.hbm [shape: f32[128,128], index: 3, kind: input, shape index: {}]   ;;  %s2793_s4 = inlined_call_operand.vmem [shape: f32[1,128], index: 4, kind: input, shape index: {}]   ;;  %s2794_s5 = inlined_call_operand.hbm [shape: f32[128,128], index: 5, kind: input, shape index: {}]   ;;  %s2795_s6 = inlined_call_operand.vmem [shape: f32[1,128], index: 6, kind: input, shape index: {}]   ;;  %s2796_s7 = inlined_call_operand.hbm [shape: f32[128,128], index: 7, kind: input, shape index: {}]   ;;  %s2797_s8 = inlined_call_operand.vmem [shape: f32[1,128], index: 8, kind: input, shape index: {}]   ;;  %s2798_s9 = inlined_call_operand.hbm [shape: f32[128,128], index: 9, kind: input, shape index: {}]   ;;  %s2799_s10 = inlined_call_operand.hbm [shape: f32[128,128], index: 10, kind: input, shape index: {}]   ;;  %s2800_s11 = inlined_call_operand.hbm [shape: f32[128,128], index: 11, kind: input, shape index: {}]   ;;  %s2801_s12 = inlined_call_operand.vmem [shape: f32[1,128], index: 12, kind: input, shape index: {}]   ;;  %s2802_s13 = inlined_call_operand.hbm [shape: f32[4,8,128], index: 13, kind: output, shape index: {}]  }
   0x1   :  { %2827 = sst [smem:[#allocation31_spill]] %s2790_s1 }
   0x2   :  { %2828 = sst [smem:[#allocation32_spill]] %s2792_s3 }
   0x3   :  { %2829 = sst [smem:[#allocation33_spill]] %s2793_s4 }
   0x4   :  { %2830 = sst [smem:[#allocation34_spill]] %s2795_s6 }
   0x5   :  { %2831 = sst [smem:[#allocation35_spill]] %s2796_s7 }
   0x6   :  { %2832 = sst [smem:[#allocation36_spill]] %s2797_s8 }
   0x7   :  { %2833 = sst [smem:[#allocation37_spill]] %s2799_s10 }
   0x8   :  { %2834 = sst [smem:[#allocation38_spill]] %s2801_s12 }
   0x9   :  { %2835 = sst [smem:[#allocation39_spill]] %s2802_s13 }
   0xa   :  { %18 = vsyncpa [#allocation3], 0 }
   0xb   :  { %20 = vsyncpa [#allocation3 + $0x1], 0 }
   0xc   :  { %21 = vsyncpa [#allocation6], 0 }
   0xd   :  { %23 = vsyncpa [#allocation6 + $0x1], 0 }
   0xe   :  { %24 = vsyncpa [#allocation9], 0 }
   0xf   :  { %25 = vsyncpa [#allocation12], 0 }
  0x10   :  { %26 = vsyncpa [#allocation15], 0 }
  0x11   :  { %27 = vsyncpa [#allocation4], 0 }
  0x12   :  { %29 = vsyncpa [#allocation4 + $0x1], 0  ;;  %s2384_s25 = smov 0   ;;  %s2386_s26 = smov 0  }
  0x13   :  { %s2388_s27 = smov 0   ;;  %s2390_s28 = smov 0  }
  0x14 LB: > { %2836 = sst [smem:[#allocation24_spill]] %s2281_s25  ;;  %s2295_s29 = smov [#allocation8]   ;;  %s2293_s28 = sphi %s2390_s28, %s2881_s28   ;;  %s2289_s27 = sphi %s2388_s27, %s2883_s27   ;;  %s2285_s26 = sphi %s2386_s26, %s2885_s26   ;;  %s2281_s25 = sphi %s2384_s25, %s2884_s25  }
  0x15   : > { %2837 = sst [smem:[#allocation25_spill]] %s2289_s27  ;;  %s366_s30 = sshll.u32 %s2295_s29, 4  ;;  %s367_s30 = int_to_ptr.vmem [resolvable:$true] %s366_s30 }
  0x16   : > { %s2405_s14 = sadd.s32 4294967295, %s2293_s28   ;;  %p1481_p0 = scmp.ge.s32.totalorder %s2293_s28, 1 }
  0x17   : > { %2838 = sst [smem:[#allocation26_spill]] %s2405_s14  ;;  %p2816_p1 = scmp.eq.s32.totalorder %s2405_s14, 0 }
  0x18   : > { %p354_p2 = scmp.lt.s32.totalorder %s2293_s28, 3  ;;  %s2296_s16 = smov [#allocation11]  }
  0x19   : > { %s398_s17 = sshll.u32 %s2296_s16, 4  ;;  %s2297_s19 = smov [#allocation14]   ;;  %s2423_s17 = int_to_ptr.vmem [resolvable:$true] %s398_s17 }
  0x1a   : > { %p2410_p3 = pnand %p1481_p0, %p354_p2  ;;  %s427_s20 = sshll.u32 %s2297_s19, 4  ;;  %s2425_s20 = int_to_ptr.vmem [resolvable:$true] %s427_s20 }
  0x1b   : > { %s1984_s22 = scalar_lea.vmem %s367_s30, 2048  ;;  %p1992_p11 = scmp.lt.s32.totalorder %s367_s30, %s367_s30 }
  0x1c   : > { %s2839_s15 = scalar_select %p2410_p3, 1, 0 }
  0x1d   : > { %p1871_p5 = pneg %p2410_p3  ;;  %p1985_p8 = scmp.ne.s32.totalorder %s367_s30, %s1984_s22 }
  0x1e   : > { %p1993_p12 = scmp.lt.s32.totalorder %s1984_s22, %s1984_s22 }
  0x1f   : > { %p2419_p6 = pnand %p1871_p5, %p2816_p1 }
  0x20   : > { %p1994_p13 = por %p1993_p12, %p1992_p11 }
  0x21   : > { %s2840_s18 = scalar_select %p2419_p6, 1, 0 }
  0x22   : > { %p2429_p7 = pneg %p2419_p6 }
  0x24   : > { %s2841_s21 = scalar_select %p2429_p7, 1, 0 }
  0x25   : > { %p1987_p9 = pnand %p1985_p8, %p2429_p7 }
  0x27   : > { %p1988_p10 = pneg %p1987_p9 }
  0x29   : > { %p1995_p0 = pnand %p1994_p13, %p1988_p10 }
  0x2b   : > { %1998 = shalt.err (!%p1995_p0)
}
  0x2c   : > { %s2803_s23 = smov 128   ;;  %s2806_s24 = smov 8  }
  0x2d   : > { %s2842_s3 = sld [smem:[#allocation32_spill]]  ;;  %s2010_s19 = scalar_lea.vmem %s2423_s17, 2048 }
  0x2e   : > { %p2011_p2 = scmp.ne.s32.totalorder %s2423_s17, %s2010_s19  ;;  %p2018_p9 = scmp.lt.s32.totalorder %s2423_s17, %s2423_s17 }
  0x2f   : > { %p2019_p10 = scmp.lt.s32.totalorder %s2010_s19, %s2010_s19 }
  0x30   : > { %p2013_p5 = pnand %p2011_p2, %p2429_p7 }
  0x31   : > { %p2020_p11 = por %p2019_p10, %p2018_p9 }
  0x32   : > { %p2014_p8 = pneg %p2013_p5 }
  0x33   : > { %1874 = dma.hbm_to_vmem [thread:$0]  (!%p2419_p6), %s2842_s3, 2048, %s367_s30, [#allocation9], %s2803_s23, %s2803_s23, %s2806_s24  }
  0x34   : > { %p2021_p12 = pnand %p2020_p11, %p2014_p8 }
  0x36   : > { %2024 = shalt.err (!%p2021_p12)
}
  0x37   : > { %s2843_s7 = sld [smem:[#allocation35_spill]]  ;;  %s2036_s30 = scalar_lea.vmem %s2425_s20, 2048 }
  0x38   : > { %p2037_p13 = scmp.ne.s32.totalorder %s2425_s20, %s2036_s30  ;;  %p2044_p5 = scmp.lt.s32.totalorder %s2425_s20, %s2425_s20 }
  0x39   : > { %p2045_p8 = scmp.lt.s32.totalorder %s2036_s30, %s2036_s30 }
  0x3a   : > { %p2039_p0 = pnand %p2037_p13, %p2429_p7 }
  0x3b   : > { %p2046_p9 = por %p2045_p8, %p2044_p5 }
  0x3c   : > { %p2040_p2 = pneg %p2039_p0 }
  0x3d   : > { %1880 = dma.hbm_to_vmem [thread:$0]  (!%p2419_p6), %s2843_s7, 2048, %s2423_s17, [#allocation12], %s2803_s23, %s2803_s23, %s2806_s24  }
  0x3e   : > { %p2047_p10 = pnand %p2046_p9, %p2040_p2 }
  0x40   : > { %2050 = shalt.err (!%p2047_p10)
}
  0x41   : > { %s2844_s10 = sld [smem:[#allocation37_spill]]  ;;  %s1480_s17 = sadd.s32 4294967294, %s2293_s28  }
  0x42   : > { %s2475_s22 = sadd.s32 1, %s2293_s28   ;;  %s42_s29 = sadd.s32 1, %s2289_s27 }
  0x43   : > { %2845 = sst [smem:[#allocation27_spill]] %s2475_s22  ;;  %s39_s30 = ssub.s32 %s2293_s28, %s2475_s22 }
  0x44   : > { %p49_p11 = scmp.ne.s32.totalorder %s2289_s27, %s2285_s26  ;;  %p40_p12 = scmp.eq.s32.totalorder %s39_s30, 0 }
  0x45   : > { %p50_p13 = scmp.eq.s32.totalorder %s2293_s28, 0  ;;  %p55_p0 = scmp.ne.s32.totalorder %s2285_s26, %s2281_s25 }
  0x46   : > { %p341_p2 = scmp.eq.s32.totalorder %s2405_s14, 1  ;;  %p347_p10 = scmp.eq.s32.totalorder %s1480_s17, 1 }
  0x47   : > { %1886 = dma.hbm_to_vmem [thread:$0]  (!%p2419_p6), %s2844_s10, 2048, %s2425_s20, [#allocation15], %s2803_s23, %s2803_s23, %s2806_s24  }
  0x48   : > { %s2487_s16 = scalar_select %p40_p12, %s2289_s27, %s42_s29  }
  0x49   : > { %p51_p5 = por %p50_p13, %p49_p11  ;;  %p2491_p8 = por %p2816_p1, %p55_p0 }
  0x4a   : > { %2846 = sst [smem:[#allocation28_spill]] %s2487_s16  ;;  %p2495_p9 = por %p341_p2, %p49_p11 }
  0x4b   : > { %s2847_s20 = scalar_select %p2491_p8, 1, 0 }
  0x4c   : > { %s2848_s19 = scalar_select %p2495_p9, 1, 0 }
  0x4d   : > { %p1910_p4 = scmp.lt.s32.totalorder %s2293_s28, 2  ;;  %s2501_s23 = sand.u32 1, %s2289_s27  }
  0x4e   : > { %2849 = sst [smem:[#allocation29_spill]] %s2848_s19  ;;  %p2503_p3 = por %p347_p10, %p55_p0 }
  0x4f   : > { %s478_s29 = sand.u32 1, %s2293_s28   ;;  %p2508_p12 = pnand %p1910_p4, %p51_p5 }
  0x50   : > { %s2850_s30 = scalar_select %p2503_p3, 1, 0 }
  0x51   : > { %s2814_s3 = sshll.u32 %s2501_s23, 4  ;;  %s2815_s7 = sshll.u32 %s2293_s28, 8 }
  0x52   : > { %2851 = sst [smem:[#allocation30_spill]] %s2850_s30  ;;  %s482_s27 = scalar_lea.vmem [#allocation5], %s2814_s3 }
  0x53   : > { %s2853_s1 = sld [smem:[#allocation31_spill]]  ;;  %s489_s22 = sshll.u32 %s482_s27, 4  ;;  %s2523_s22 = int_to_ptr.vmem [resolvable:$true] %s489_s22 }
  0x54   : > { %s2525_s30 = scalar_lea.sflag [#allocation6], %s478_s29  ;;  %p2531_p11 = pneg %p2508_p12 }
  0x59   : > { %s2519_s16 = scalar_lea.hbm %s2853_s1, %s2815_s7  ;;  %s2056_s3 = scalar_lea.hbm %s2853_s1, 512 }
  0x5a   : > { %s2051_s25 = scalar_lea.hbm %s2519_s16, 256  ;;  %p2057_p2 = scmp.lt.s32.totalorder %s2519_s16, %s2853_s1 }
  0x5b   : > { %p2052_p4 = scmp.ne.s32.totalorder %s2519_s16, %s2051_s25  ;;  %p2058_p5 = scmp.lt.s32.totalorder %s2056_s3, %s2051_s25 }
  0x5d   : > { %p2054_p13 = pnand %p2531_p11, %p2052_p4  ;;  %p2059_p10 = por %p2058_p5, %p2057_p2 }
  0x5f   : > { %p2055_p0 = pneg %p2054_p13 }
  0x61   : > { %p2060_p1 = pnand %p2059_p10, %p2055_p0 }
  0x63   : > { %2063 = shalt.err (!%p2060_p1)
}
  0x64   : > { %s2064_s29 = scalar_lea.vmem %s2523_s22, 256  ;;  %s2300_s19 = smov [#allocation5]  }
  0x65   : > { %p2065_p3 = scmp.ne.s32.totalorder %s2523_s22, %s2064_s29  ;;  %s2069_s10 = sshll.u32 %s2300_s19, 4  ;;  %s2070_s10 = int_to_ptr.vmem [resolvable:$false] %s2069_s10 }
  0x66   : > { %s2071_s17 = scalar_lea.vmem %s2070_s10, 512  ;;  %p2072_p9 = scmp.lt.s32.totalorder %s2523_s22, %s2070_s10 }
  0x67   : > { %p2067_p4 = pnand %p2065_p3, %p2531_p11  ;;  %p2073_p8 = scmp.lt.s32.totalorder %s2071_s17, %s2064_s29 }
  0x69   : > { %p2068_p13 = pneg %p2067_p4  ;;  %p2074_p6 = por %p2073_p8, %p2072_p9 }
  0x6b   : > { %p2075_p7 = pnand %p2074_p6, %p2068_p13 }
  0x6d   : > { %2078 = shalt.err (!%p2075_p7)
}
  0x6e   : > { %s2855_s3 = smov 8   ;;  %s2856_s7 = smov 128  }
  0x6f   : > { %1896 = dma.hbm_to_vmem [thread:$0]  (!%p2508_p12), %s2519_s16, 256, %s2523_s22, %s2525_s30, %s2856_s7, %s2856_s7, %s2855_s3  }
  0x70   : > { %s2857_s25 = sshll.u32 %s2293_s28, 8  ;;  %s2858_s10 = sshll.u32 %s2501_s23, 4 }
  0x71   : > { %s2562_s29 = scalar_lea.hbm %s2791_s2, %s2857_s25  ;;  %s503_s17 = scalar_lea.vmem [#allocation7], %s2858_s10 }
  0x72   : > { %s510_s1 = sshll.u32 %s503_s17, 4  ;;  %s2301_s12 = smov [#allocation10]   ;;  %s2566_s1 = int_to_ptr.vmem [resolvable:$true] %s510_s1 }
  0x73   : > { %s382_s8 = sshll.u32 %s2301_s12, 4  ;;  %s2302_s6 = smov [#allocation13]   ;;  %s383_s8 = int_to_ptr.vmem [resolvable:$true] %s382_s8 }
  0x74   : > { %s414_s4 = sshll.u32 %s2302_s6, 4  ;;  %s2090_s14 = scalar_lea.vmem %s383_s8, 2048  ;;  %s415_s4 = int_to_ptr.vmem [resolvable:$true] %s414_s4 }
  0x75   : > { %p2091_p1 = scmp.ne.s32.totalorder %s383_s8, %s2090_s14  ;;  %p2859_p3 = scmp.ne.s32.totalorder %s2841_s21, 0 }
  0x76   : > { %p2098_p8 = scmp.lt.s32.totalorder %s383_s8, %s383_s8  ;;  %p2099_p9 = scmp.lt.s32.totalorder %s2090_s14, %s2090_s14 }
  0x77   : > { %p2093_p6 = pnand %p2091_p1, %p2859_p3 }
  0x78   : > { %p2100_p0 = por %p2099_p9, %p2098_p8 }
  0x79   : > { %p2094_p7 = pneg %p2093_p6 }
  0x7b   : > { %p2101_p2 = pnand %p2100_p0, %p2094_p7 }
  0x7d   : > { %2104 = shalt.err (!%p2101_p2)
}
  0x7e   : > { %p2860_p5 = scmp.ne.s32.totalorder %s2840_s18, 0  ;;  %s2116_s6 = scalar_lea.vmem %s415_s4, 2048 }
  0x7f   : > { %p2117_p10 = scmp.ne.s32.totalorder %s415_s4, %s2116_s6  ;;  %p2124_p1 = scmp.lt.s32.totalorder %s415_s4, %s415_s4 }
  0x80   : > { %1877 = dma.hbm_to_vmem [thread:$0]  (!%p2860_p5), %s2794_s5, 2048, %s383_s8, [#allocation9], %s2856_s7, %s2856_s7, %s2855_s3  }
  0x81   : > { %p2119_p4 = pnand %p2117_p10, %p2859_p3  ;;  %p2125_p6 = scmp.lt.s32.totalorder %s2116_s6, %s2116_s6 }
  0x83   : > { %p2120_p13 = pneg %p2119_p4  ;;  %p2126_p7 = por %p2125_p6, %p2124_p1 }
  0x85   : > { %p2127_p8 = pnand %p2126_p7, %p2120_p13 }
  0x87   : > { %2130 = shalt.err (!%p2127_p8)
}
  0x88   : > { %1883 = dma.hbm_to_vmem [thread:$0]  (!%p2860_p5), %s2798_s9, 2048, %s415_s4, [#allocation12], %s2856_s7, %s2856_s7, %s2855_s3  }
  0x89   : > { %s2303_s8 = smov [#allocation16]   ;;  %s1489_s19 = sshll.u32 %s2501_s23, 1 }
  0x8a   : > { %s440_s25 = sshll.u32 %s2303_s8, 4  ;;  %s441_s25 = int_to_ptr.vmem [resolvable:$true] %s440_s25 }
  0x8b   : > { %s2142_s27 = scalar_lea.vmem %s441_s25, 2048  ;;  %p2150_p10 = scmp.lt.s32.totalorder %s441_s25, %s441_s25 }
  0x8c   : > { %p2143_p9 = scmp.ne.s32.totalorder %s441_s25, %s2142_s27  ;;  %p2151_p4 = scmp.lt.s32.totalorder %s2142_s27, %s2142_s27 }
  0x8e   : > { %p2145_p0 = pnand %p2143_p9, %p2859_p3  ;;  %p2152_p13 = por %p2151_p4, %p2150_p10 }
  0x90   : > { %p2146_p2 = pneg %p2145_p0 }
  0x92   : > { %p2153_p1 = pnand %p2152_p13, %p2146_p2 }
  0x94   : > { %2156 = shalt.err (!%p2153_p1)
}
  0x95   : > { %1889 = dma.hbm_to_vmem [thread:$0]  (!%p2860_p5), %s2800_s11, 2048, %s441_s25, [#allocation15], %s2856_s7, %s2856_s7, %s2855_s3  }
  0x96   : > { %s1518_s21 = sshll.u32 %s2293_s28, 5  ;;  %s461_s18 = scalar_lea.vmem [#allocation2], %s1489_s19 }
  0x97   : > { %s2603_s12 = scalar_lea.hbm %s2789_s0, %s1518_s21  ;;  %s468_s6 = sshll.u32 %s461_s18, 4  ;;  %s2605_s6 = int_to_ptr.vmem [resolvable:$true] %s468_s6 }
  0x98   : > { %s458_s14 = scalar_lea.sflag [#allocation3], %s2501_s23  ;;  %s2157_s16 = scalar_lea.hbm %s2603_s12, 32 }
  0x99   : > { %p2158_p3 = scmp.ne.s32.totalorder %s2603_s12, %s2157_s16  ;;  %s2162_s27 = scalar_lea.hbm %s2789_s0, 64 }
  0x9a   : > { %p2163_p5 = scmp.lt.s32.totalorder %s2603_s12, %s2789_s0  ;;  %p2164_p8 = scmp.lt.s32.totalorder %s2162_s27, %s2157_s16 }
  0x9b   : > { %p2160_p6 = pnand %p2158_p3, %p2531_p11 }
  0x9c   : > { %p2165_p9 = por %p2164_p8, %p2163_p5 }
  0x9d   : > { %p2161_p7 = pneg %p2160_p6 }
  0x9f   : > { %p2166_p0 = pnand %p2165_p9, %p2161_p7 }
  0xa1   : > { %2169 = shalt.err (!%p2166_p0)
}
  0xa2   : > { %s2170_s19 = scalar_lea.vmem %s2605_s6, 32  ;;  %s2304_s21 = smov [#allocation2]  }
  0xa3   : > { %p2171_p2 = scmp.ne.s32.totalorder %s2605_s6, %s2170_s19  ;;  %s2175_s17 = sshll.u32 %s2304_s21, 4  ;;  %s2176_s17 = int_to_ptr.vmem [resolvable:$false] %s2175_s17 }
  0xa4   : > { %s2177_s22 = scalar_lea.vmem %s2176_s17, 64  ;;  %p2178_p13 = scmp.lt.s32.totalorder %s2605_s6, %s2176_s17 }
  0xa5   : > { %p2173_p10 = pnand %p2171_p2, %p2531_p11  ;;  %p2179_p1 = scmp.lt.s32.totalorder %s2177_s22, %s2170_s19 }
  0xa7   : > { %p2174_p4 = pneg %p2173_p10  ;;  %p2180_p3 = por %p2179_p1, %p2178_p13 }
  0xa9   : > { %p2181_p6 = pnand %p2180_p3, %p2174_p4 }
  0xab   : > { %2184 = shalt.err (!%p2181_p6)
}
  0xac   : > { %s2305_s18 = smov 16   ;;  %s2306_s16 = smov 1  }
  0xad   : > { %1893 = dma.hbm_to_vmem [thread:$0]  (!%p2508_p12), %s2603_s12, 32, %s2605_s6, %s458_s14, %s2305_s18, %s2305_s18, %s2306_s16  }
  0xae   : > { %s2185_s8 = scalar_lea.hbm %s2562_s29, 256  ;;  %s2190_s4 = scalar_lea.hbm %s2791_s2, 512 }
  0xaf   : > { %p2186_p7 = scmp.ne.s32.totalorder %s2562_s29, %s2185_s8  ;;  %p2191_p9 = scmp.lt.s32.totalorder %s2562_s29, %s2791_s2 }
  0xb0   : > { %p2192_p0 = scmp.lt.s32.totalorder %s2190_s4, %s2185_s8 }
  0xb1   : > { %p2188_p5 = pnand %p2186_p7, %p2531_p11 }
  0xb2   : > { %p2193_p2 = por %p2192_p0, %p2191_p9 }
  0xb3   : > { %p2189_p8 = pneg %p2188_p5 }
  0xb5   : > { %p2194_p10 = pnand %p2193_p2, %p2189_p8 }
  0xb7   : > { %2197 = shalt.err (!%p2194_p10)
}
  0xb8   : > { %s2198_s23 = scalar_lea.vmem %s2566_s1, 256  ;;  %s2307_s12 = smov [#allocation7]  }
  0xb9   : > { %p2199_p4 = scmp.ne.s32.totalorder %s2566_s1, %s2198_s23  ;;  %s2203_s6 = sshll.u32 %s2307_s12, 4  ;;  %s2204_s6 = int_to_ptr.vmem [resolvable:$false] %s2203_s6 }
  0xba   : > { %s2205_s14 = scalar_lea.vmem %s2204_s6, 512  ;;  %p2206_p3 = scmp.lt.s32.totalorder %s2566_s1, %s2204_s6 }
  0xbb   : > { %p2201_p13 = pnand %p2199_p4, %p2531_p11  ;;  %p2207_p6 = scmp.lt.s32.totalorder %s2205_s14, %s2198_s23 }
  0xbd   : > { %p2202_p1 = pneg %p2201_p13  ;;  %p2208_p7 = por %p2207_p6, %p2206_p3 }
  0xbf   : > { %p2209_p5 = pnand %p2208_p7, %p2202_p1 }
  0xc1   : > { %2212 = shalt.err (!%p2209_p5)
}
  0xc2   : > { %1899 = dma.hbm_to_vmem [thread:$0]  (!%p2508_p12), %s2562_s29, 256, %s2566_s1, %s2525_s30, %s2856_s7, %s2856_s7, %s2855_s3  }
  0xc3   : > { %p2861_p11 = scmp.ne.s32.totalorder %s2839_s15, 0 }
  0xc4   : > { %s2657_s13 = sand.u32 (!%p2861_p11), 1, %s2285_s26   ;;  %p2862_p8 = scmp.ne.s32.totalorder (!%p2861_p11), %s2847_s20, 0 }
  0xc5   : > { %522 = sbr.rel (%p2861_p11) target bundleno = 1123 (0x463), region = 72  ;;  %s1499_s21 = sshll.u32 (!%p2861_p11), %s2657_s13, 1 }
  0xc6   : > { %s525_s17 = scalar_lea.sflag (!%p2861_p11), [#allocation3], %s2657_s13  ;;  %s2661_s22 = scalar_lea.vmem (!%p2861_p11), [#allocation2], %s1499_s21 }
  0xca   : > { %2256 = dma.done.wait (%p2862_p8), %s525_s17, 32  }
  0xcb   : > { %2258 = vsyncadd (%p2862_p8), %s525_s17, 4294967264  ;;  %s2863_s24 = sld [smem:[#allocation26_spill]]  ;;  %s2669_s15 = sshll.u32 %s2657_s13, 4 }
  0xcc   : > { %s537_s3 = scalar_lea.vmem [#allocation5], %s2669_s15 }
  0xd1   : > { %s533_s1 = sand.u32 1, %s2863_s24  }
  0xd2   : > { %s534_s30 = scalar_lea.sflag [#allocation6], %s533_s1 }
  0xd3   : > { %2260 = dma.done.wait (%p2862_p8), %s534_s30, 512  }
  0xd4   : > { %2262 = vsyncadd (%p2862_p8), %s534_s30, 4294966784  ;;  %s546_s7 = scalar_lea.vmem [#allocation7], %s2669_s15  ;;  %p2864_p12 = scmp.eq.s32.totalorder %s2863_s24, 0 }
  0xd6   : > { %2264 = dma.done.wait (%p2864_p12), [#allocation9], 4096   ;;  %p2865_p9 = pmov %p2864_p12 }
  0xd8   : > { %2266 = vsyncadd (%p2865_p9), [#allocation9], 4294963200  ;;  %p2866_p0 = pmov %p2865_p9 }
  0xda   : > { %2268 = dma.done.wait (%p2866_p0), [#allocation12], 4096   ;;  %p2867_p2 = pmov %p2866_p0 }
  0xdb   : > { %p2868_p10 = pmov %p2866_p0 }
  0xdc   : > { %2270 = vsyncadd (%p2867_p2), [#allocation12], 4294963200 }
  0xdd   : > { %2272 = dma.done.wait (%p2868_p10), [#allocation15], 4096   ;;  %p2869_p4 = pmov %p2866_p0 }
  0xde   : > { %v2308_v0 = vmov 0.0   ;;  %vm2309_vm0 = vmmov 0   ;;  %v644_v1 = vld [vmem:[#allocation8 + $0x78] sm:$0xff]  ;;  %v643_v2 = vld [vmem:[#allocation8 + $0x70] sm:$0xff]  ;;  %v642_v5 = vld [vmem:[#allocation8 + $0x68] sm:$0xff]  ;;  %v658_v19 = vlaneseq  ;;  %s2870_s18 = sld [smem:[#allocation33_spill]] }
  0xdf   : > { %2274 = vsyncadd (%p2869_p4), [#allocation15], 4294963200  ;;  %1629 = vmatprep.subr.mxu0 %v2308_v0  ;;  %1661 = vmatprep.mubr.msk.f32.mxu0 %vm2309_vm0, %v2308_v0  ;;  %v757_v3 = vld [vmem:[#allocation10 + $0x78] sm:$0xff]  ;;  %v756_v4 = vld [vmem:[#allocation10 + $0x70] sm:$0xff]  ;;  %v2310_v17 = vmov 1966171168  }
  0xe0   : > { %1630 = vmatpush3.msra.mxu0 %v644_v1  ;;  %1664 = vmatprep.subr.mxu1 %v757_v3  ;;  %v755_v6 = vld [vmem:[#allocation10 + $0x68] sm:$0xff]  ;;  %v641_v7 = vld [vmem:[#allocation8 + $0x60] sm:$0xff]  ;;  %v640_v9 = vld [vmem:[#allocation8 + $0x58] sm:$0xff]  ;;  %v656_v18 = vunpack.c.l.s4 %v2310_v17  ;;  %v2699_v25 = vshrl.u32 %v658_v19, 7  ;;  %s2871_s25 = sld [smem:[#allocation34_spill]]  ;;  %s622_s14 = scalar_lea.vmem [#allocation17], %s2669_s15 }
  0xe1   : > { %1631 = vmatprep.subr.mxu0 %v2308_v0  ;;  %1665 = vmatpush3.msra.mxu1 %v757_v3  ;;  %v754_v8 = vld [vmem:[#allocation10 + $0x60] sm:$0xff]  ;;  %v753_v10 = vld [vmem:[#allocation10 + $0x58] sm:$0xff]  ;;  %v639_v11 = vld [vmem:[#allocation8 + $0x50] sm:$0xff]  ;;  %s2872_s10 = sld [smem:[#allocation36_spill]]  ;;  %s1307_s21 = sshll.u32 %s622_s14, 4  ;;  %s2741_s21 = int_to_ptr.vmem [resolvable:$true] %s1307_s21 }
  0xe2   : > { %1632 = vmatpush3.msra.mxu0 %v643_v2  ;;  %1666 = vmatprep.subr.mxu1 %v756_v4  ;;  %v752_v12 = vld [vmem:[#allocation10 + $0x50] sm:$0xff]  ;;  %v638_v13 = vld [vmem:[#allocation8 + $0x48] sm:$0xff]  ;;  %v637_v15 = vld [vmem:[#allocation8 + $0x40] sm:$0xff]  ;;  %v657_v24 = vunpack.c.0.s8 %v656_v18  ;;  %s2873_s12 = sld [smem:[#allocation38_spill]]  ;;  %s1521_s17 = sshll.u32 %s2863_s24, 8 }
  0xe3   : > { %1633 = vmatprep.subr.mxu0 %v2308_v0  ;;  %1667 = vmatpush3.msra.mxu1 %v756_v4  ;;  %v751_v14 = vld [vmem:[#allocation10 + $0x48] sm:$0xff]  ;;  %v750_v16 = vld [vmem:[#allocation10 + $0x40] sm:$0xff]  ;;  %v636_v20 = vld [vmem:[#allocation8 + $0x38] sm:$0xff]  ;;  %s2874_s6 = sld [smem:[#allocation29_spill]]  ;;  %s2213_s15 = scalar_lea.vmem %s2741_s21, 256 }
  0xe4   : > { %1634 = vmatpush3.msra.mxu0 %v642_v5  ;;  %1668 = vmatprep.subr.mxu1 %v755_v6  ;;  %v749_v21 = vld [vmem:[#allocation10 + $0x38] sm:$0xff]  ;;  %v635_v22 = vld [vmem:[#allocation8 + $0x30] sm:$0xff]  ;;  %v634_v28 = vld [vmem:[#allocation8 + $0x28] sm:$0xff]  ;;  %v2706_v33 = vsub.s32 %v657_v24, %v2699_v25  ;;  %s2875_s30 = sld [smem:[#allocation39_spill]]  ;;  %p2214_p13 = scmp.ne.s32.totalorder %s2741_s21, %s2213_s15 }
  0xe5   : > { %1635 = vmatprep.subr.mxu0 %v2308_v0  ;;  %1669 = vmatpush3.msra.mxu1 %v755_v6  ;;  %v748_v23 = vld [vmem:[#allocation10 + $0x30] sm:$0xff]  ;;  %v627_v26 = vld [vmem:[%s2661_s22] sm:$0x1]  ;;  %v628_v27 = vld [vmem:[%s2661_s22 + $0x1] sm:$0x1]  ;;  %s2311_s24 = smov [#allocation17]  }
  0xe6   : > { %1636 = vmatpush3.msra.mxu0 %v641_v7  ;;  %1670 = vmatprep.subr.mxu1 %v754_v8  ;;  %v747_v29 = vld [vmem:[#allocation10 + $0x28] sm:$0xff]  ;;  %v633_v30 = vld [vmem:[#allocation8 + $0x20] sm:$0xff]  ;;  %v654_v32 = vcombine.low %v627_v26, %v628_v27  ;;  %v632_v34 = vld [vmem:[#allocation8 + $0x18] sm:$0xff]  ;;  %v965_v7 = vsub.s32 0, %v2699_v25  ;;  %s2217_s20 = sshll.u32 %s2311_s24, 4  ;;  %s2218_s20 = int_to_ptr.vmem [resolvable:$false] %s2217_s20 }
  0xe7   : > { %1637 = vmatprep.subr.mxu0 %v2308_v0  ;;  %1671 = vmatpush3.msra.mxu1 %v754_v8  ;;  %v746_v31 = vld [vmem:[#allocation10 + $0x20] sm:$0xff]  ;;  %v745_v35 = vld [vmem:[#allocation10 + $0x18] sm:$0xff]  ;;  %v631_v36 = vld [vmem:[#allocation8 + $0x10] sm:$0xff]  ;;  %s2219_s29 = scalar_lea.vmem %s2218_s20, 512  ;;  %p2220_p7 = scmp.lt.s32.totalorder %s2741_s21, %s2218_s20 }
  0xe8   : > { %1638 = vmatpush3.msra.mxu0 %v640_v9  ;;  %1672 = vmatprep.subr.mxu1 %v753_v10  ;;  %v744_v37 = vld [vmem:[#allocation10 + $0x10] sm:$0xff]  ;;  %v661_v38 = vrot.slane %v654_v32, %v2706_v33  ;;  %v630_v39 = vld [vmem:[#allocation8 + $0x8] sm:$0xff]  ;;  %v629_v41 = vld [vmem:[#allocation8] sm:$0xff]  ;;  %p2221_p5 = scmp.lt.s32.totalorder %s2219_s29, %s2213_s15 }
  0xe9   : > { %1639 = vmatprep.subr.mxu0 %v2308_v0  ;;  %1673 = vmatpush3.msra.mxu1 %v753_v10  ;;  %v743_v40 = vld [vmem:[#allocation10 + $0x8] sm:$0xff]  ;;  %v742_v43 = vld [vmem:[#allocation10] sm:$0xff]  ;;  %v990_v45 = vld [vmem:[#allocation13 + $0x78] sm:$0xff]  ;;  %p2876_p1 = scmp.ne.s32.totalorder %s2874_s6, 0 }
  0xea   : > { %1640 = vmatpush3.msra.mxu0 %v639_v11  ;;  %1674 = vmatprep.subr.mxu1 %v752_v12  ;;  %v668_v42 = vrot.slane %v661_v38, %v2706_v33  ;;  %v740_v44 = vld [vmem:[%s537_s3] sm:$0xff]  ;;  %v741_v46 = vld [vmem:[%s537_s3 + $0x8] sm:$0xff]  ;;  %s2746_s3 = scalar_lea.hbm %s2875_s30, %s1521_s17  ;;  %p2222_p11 = por %p2221_p5, %p2220_p7 }
  0xeb   : > { %1641 = vmatprep.subr.mxu0 %v2308_v0  ;;  %1675 = vmatpush3.msra.mxu1 %v752_v12  ;;  %v989_v47 = vld [vmem:[#allocation13 + $0x70] sm:$0xff]  ;;  %v988_v48 = vld [vmem:[#allocation13 + $0x68] sm:$0xff]  ;;  %v987_v49 = vld [vmem:[#allocation13 + $0x60] sm:$0xff]  ;;  %p2215_p3 = pnand %p2214_p13, %p2876_p1 }
  0xec   : > { %1642 = vmatpush3.msra.mxu0 %v638_v13  ;;  %1676 = vmatprep.subr.mxu1 %v751_v14  ;;  %v986_v50 = vld [vmem:[#allocation13 + $0x58] sm:$0xff]  ;;  %v985_v51 = vld [vmem:[#allocation13 + $0x50] sm:$0xff]  ;;  %v984_v52 = vld [vmem:[#allocation13 + $0x48] sm:$0xff] }
  0xed   : > { %1643 = vmatprep.subr.mxu0 %v2308_v0  ;;  %1677 = vmatpush3.msra.mxu1 %v751_v14  ;;  %v983_v53 = vld [vmem:[#allocation13 + $0x40] sm:$0xff]  ;;  %v982_v54 = vld [vmem:[#allocation13 + $0x38] sm:$0xff]  ;;  %v981_v55 = vld [vmem:[#allocation13 + $0x30] sm:$0xff]  ;;  %p2216_p6 = pneg %p2215_p3 }
  0xee   : > { %1644 = vmatpush3.msra.mxu0 %v637_v15  ;;  %1678 = vmatprep.subr.mxu1 %v750_v16  ;;  %v980_v56 = vld [vmem:[#allocation13 + $0x28] sm:$0xff]  ;;  %v979_v57 = vld [vmem:[#allocation13 + $0x20] sm:$0xff]  ;;  %v978_v58 = vld [vmem:[#allocation13 + $0x18] sm:$0xff] }
  0xef   : > { %1645 = vmatprep.subr.mxu0 %v2308_v0  ;;  %1679 = vmatpush3.msra.mxu1 %v750_v16  ;;  %v977_v59 = vld [vmem:[#allocation13 + $0x10] sm:$0xff]  ;;  %v976_v60 = vld [vmem:[#allocation13 + $0x8] sm:$0xff]  ;;  %v975_v61 = vld [vmem:[#allocation13] sm:$0xff]  ;;  %p2223_p8 = pnand %p2222_p11, %p2216_p6 }
  0xf0   : > { %1646 = vmatpush3.msra.mxu0 %v636_v20  ;;  %1680 = vmatprep.subr.mxu1 %v749_v21  ;;  %v857_v62 = vld [vmem:[#allocation11 + $0x78] sm:$0xff]  ;;  %v856_v63 = vld [vmem:[#allocation11 + $0x70] sm:$0xff]  ;;  %v855_v18 = vld [vmem:[#allocation11 + $0x68] sm:$0xff] }
  0xf1   : > { %1647 = vmatprep.subr.mxu0 %v2308_v0  ;;  %1681 = vmatpush3.msra.mxu1 %v749_v21  ;;  %v1510_v5 = vld [vmem:[%s2871_s25] ss:$0 sm:$0xff]  ;;  %v854_v19 = vld [vmem:[#allocation11 + $0x60] sm:$0xff]  ;;  %v852_v21 = vld [vmem:[#allocation11 + $0x50] sm:$0xff] }
  0xf2   : > { %1648 = vmatpush3.msra.mxu0 %v635_v22  ;;  %1682 = vmatprep.subr.mxu1 %v748_v23  ;;  %v853_v20 = vld [vmem:[#allocation11 + $0x58] sm:$0xff]  ;;  %v851_v22 = vld [vmem:[#allocation11 + $0x48] sm:$0xff]  ;;  %v848_v25 = vld [vmem:[#allocation11 + $0x30] sm:$0xff] }
  0xf3   : > { %1649 = vmatprep.subr.mxu0 %v2308_v0  ;;  %1683 = vmatpush3.msra.mxu1 %v748_v23  ;;  %v850_v23 = vld [vmem:[#allocation11 + $0x40] sm:$0xff]  ;;  %v849_v24 = vld [vmem:[#allocation11 + $0x38] sm:$0xff]  ;;  %v847_v26 = vld [vmem:[#allocation11 + $0x28] sm:$0xff] }
  0xf4   : > { %1650 = vmatpush3.msra.mxu0 %v634_v28  ;;  %1684 = vmatprep.subr.mxu1 %v747_v29  ;;  %v846_v27 = vld [vmem:[#allocation11 + $0x20] sm:$0xff]  ;;  %v845_v28 = vld [vmem:[#allocation11 + $0x18] sm:$0xff] }
  0xf5   : > { %1651 = vmatprep.subr.mxu0 %v2308_v0  ;;  %1685 = vmatpush3.msra.mxu1 %v747_v29  ;;  %v844_v29 = vld [vmem:[#allocation11 + $0x10] sm:$0xff]  ;;  %v842_v32 = vld [vmem:[#allocation11] sm:$0xff]  ;;  %v1111_v38 = vld [vmem:[#allocation14 + $0x58] sm:$0xff] }
  0xf6   : > { %1652 = vmatpush3.msra.mxu0 %v633_v30  ;;  %1686 = vmatprep.subr.mxu1 %v746_v31  ;;  %v840_v30 = vld [vmem:[%s546_s7] sm:$0xff] }
  0xf7   : > { %1653 = vmatprep.subr.mxu0 %v2308_v0  ;;  %1687 = vmatpush3.msra.mxu1 %v746_v31  ;;  %v843_v31 = vld [vmem:[#allocation11 + $0x8] sm:$0xff] }
  0xf8   : > { %1654 = vmatpush3.msra.mxu0 %v632_v34  ;;  %1688 = vmatprep.subr.mxu1 %v745_v35  ;;  %v1115_v34 = vld [vmem:[#allocation14 + $0x78] sm:$0xff] }
  0xf9   : > { %1655 = vmatprep.subr.mxu0 %v2308_v0  ;;  %1689 = vmatpush3.msra.mxu1 %v745_v35  ;;  %v1114_v35 = vld [vmem:[#allocation14 + $0x70] sm:$0xff] }
  0xfa   : > { %1656 = vmatpush3.msra.mxu0 %v631_v36  ;;  %1690 = vmatprep.subr.mxu1 %v744_v37  ;;  %v1113_v36 = vld [vmem:[#allocation14 + $0x68] sm:$0xff] }
  0xfb   : > { %1657 = vmatprep.subr.mxu0 %v2308_v0  ;;  %1691 = vmatpush3.msra.mxu1 %v744_v37  ;;  %v1112_v37 = vld [vmem:[#allocation14 + $0x60] sm:$0xff] }
  0xfc   : > { %1658 = vmatpush3.msra.mxu0 %v630_v39  ;;  %1692 = vmatprep.subr.mxu1 %v743_v40  ;;  %v1110_v39 = vld [vmem:[#allocation14 + $0x50] sm:$0xff] }
  0xfd   : > { %1659 = vmatprep.subr.mxu0 %v2308_v0  ;;  %1693 = vmatpush3.msra.mxu1 %v743_v40  ;;  %v1509_v0 = vld [vmem:[%s2870_s18] ss:$0 sm:$0xff]  ;;  %v1109_v40 = vld [vmem:[#allocation14 + $0x48] sm:$0xff] }
  0xfe   : > { %1660 = vmatpush3.msra.mxu0 %v629_v41  ;;  %1694 = vmatprep.subr.mxu1 %v742_v43  ;;  %v1108_v41 = vld [vmem:[#allocation14 + $0x40] sm:$0xff] }
  0xff   : > { %1662 = vmatmul.mubr.f32.vlgmr.msra.gmra.mxu0 %v668_v42  ;;  %1695 = vmatpush3.msra.mxu1 %v742_v43  ;;  %v1107_v42 = vld [vmem:[#allocation14 + $0x38] sm:$0xff]  ;;  %v1106_v43 = vld [vmem:[#allocation14 + $0x30] sm:$0xff] }
 0x100   : > { %1696 = vmatprep.mubr.f32.mxu1 %v740_v44  ;;  %1734 = vmatprep.subr.mxu1 %v990_v45  ;;  %v1105_v44 = vld [vmem:[#allocation14 + $0x28] sm:$0xff] }
 0x101   : > { %1697 = vmatmul.mubr.f32.vlgmr.msra.gmra.mxu1 %v741_v46  ;;  %1699 = vmatprep.subr.mxu0 %v857_v62  ;;  %v1103_v46 = vld [vmem:[#allocation14 + $0x18] sm:$0xff] }
 0x102   : > { %1735 = vmatpush3.msra.mxu1 %v990_v45  ;;  %1700 = vmatpush3.msra.mxu0 %v857_v62  ;;  %v1104_v45 = vld [vmem:[#allocation14 + $0x20] sm:$0xff]  ;;  %v1196_v62 = vld [vmem:[#allocation16 + $0x18] sm:$0xff] }
 0x103   : > { %1736 = vmatprep.subr.mxu1 %v989_v47  ;;  %1701 = vmatprep.subr.mxu0 %v856_v63 }
 0x104   : > { %1737 = vmatpush3.msra.mxu1 %v989_v47  ;;  %1702 = vmatpush3.msra.mxu0 %v856_v63  ;;  %v1102_v47 = vld [vmem:[#allocation14 + $0x10] sm:$0xff] }
 0x105   : > { %1738 = vmatprep.subr.mxu1 %v988_v48  ;;  %1703 = vmatprep.subr.mxu0 %v855_v18 }
 0x106   : > { %1739 = vmatpush3.msra.mxu1 %v988_v48  ;;  %1704 = vmatpush3.msra.mxu0 %v855_v18  ;;  %v1101_v48 = vld [vmem:[#allocation14 + $0x8] sm:$0xff] }
 0x107   : > { %1740 = vmatprep.subr.mxu1 %v987_v49  ;;  %1705 = vmatprep.subr.mxu0 %v854_v19 }
 0x108   : > { %1741 = vmatpush3.msra.mxu1 %v987_v49  ;;  %1706 = vmatpush3.msra.mxu0 %v854_v19  ;;  %v1100_v49 = vld [vmem:[#allocation14] sm:$0xff] }
 0x109   : > { %1742 = vmatprep.subr.mxu1 %v986_v50  ;;  %1707 = vmatprep.subr.mxu0 %v853_v20 }
 0x10a   : > { %1743 = vmatpush3.msra.mxu1 %v986_v50  ;;  %1708 = vmatpush3.msra.mxu0 %v853_v20  ;;  %v1208_v50 = vld [vmem:[#allocation16 + $0x78] sm:$0xff] }
 0x10b   : > { %1744 = vmatprep.subr.mxu1 %v985_v51  ;;  %1709 = vmatprep.subr.mxu0 %v852_v21 }
 0x10c   : > { %1745 = vmatpush3.msra.mxu1 %v985_v51  ;;  %1710 = vmatpush3.msra.mxu0 %v852_v21  ;;  %v1207_v51 = vld [vmem:[#allocation16 + $0x70] sm:$0xff] }
 0x10d   : > { %1746 = vmatprep.subr.mxu1 %v984_v52  ;;  %1711 = vmatprep.subr.mxu0 %v851_v22 }
 0x10e   : > { %1747 = vmatpush3.msra.mxu1 %v984_v52  ;;  %1712 = vmatpush3.msra.mxu0 %v851_v22  ;;  %v1206_v52 = vld [vmem:[#allocation16 + $0x68] sm:$0xff] }
 0x10f   : > { %1748 = vmatprep.subr.mxu1 %v983_v53  ;;  %1713 = vmatprep.subr.mxu0 %v850_v23 }
 0x110   : > { %1749 = vmatpush3.msra.mxu1 %v983_v53  ;;  %1714 = vmatpush3.msra.mxu0 %v850_v23  ;;  %v1205_v53 = vld [vmem:[#allocation16 + $0x60] sm:$0xff] }
 0x111   : > { %1750 = vmatprep.subr.mxu1 %v982_v54  ;;  %1715 = vmatprep.subr.mxu0 %v849_v24 }
 0x112   : > { %1751 = vmatpush3.msra.mxu1 %v982_v54  ;;  %1716 = vmatpush3.msra.mxu0 %v849_v24  ;;  %v1204_v54 = vld [vmem:[#allocation16 + $0x58] sm:$0xff] }
 0x113   : > { %1752 = vmatprep.subr.mxu1 %v981_v55  ;;  %1717 = vmatprep.subr.mxu0 %v848_v25 }
 0x114   : > { %1753 = vmatpush3.msra.mxu1 %v981_v55  ;;  %1718 = vmatpush3.msra.mxu0 %v848_v25  ;;  %v1203_v55 = vld [vmem:[#allocation16 + $0x50] sm:$0xff] }
 0x115   : > { %1754 = vmatprep.subr.mxu1 %v980_v56  ;;  %1719 = vmatprep.subr.mxu0 %v847_v26 }
 0x116   : > { %1755 = vmatpush3.msra.mxu1 %v980_v56  ;;  %1720 = vmatpush3.msra.mxu0 %v847_v26  ;;  %v1202_v56 = vld [vmem:[#allocation16 + $0x48] sm:$0xff] }
 0x117   : > { %1756 = vmatprep.subr.mxu1 %v979_v57  ;;  %1721 = vmatprep.subr.mxu0 %v846_v27 }
 0x118   : > { %1757 = vmatpush3.msra.mxu1 %v979_v57  ;;  %1722 = vmatpush3.msra.mxu0 %v846_v27  ;;  %v1201_v57 = vld [vmem:[#allocation16 + $0x40] sm:$0xff] }
 0x119   : > { %1758 = vmatprep.subr.mxu1 %v978_v58  ;;  %1723 = vmatprep.subr.mxu0 %v845_v28 }
 0x11a   : > { %1759 = vmatpush3.msra.mxu1 %v978_v58  ;;  %1731 = vmatprep.mubr.f32.mxu0 %v840_v30  ;;  %v1200_v58 = vld [vmem:[#allocation16 + $0x38] sm:$0xff] }
 0x11b   : > { %1760 = vmatprep.subr.mxu1 %v977_v59  ;;  %1724 = vmatpush3.msra.mxu0 %v845_v28 }
 0x11c   : > { %1761 = vmatpush3.msra.mxu1 %v977_v59  ;;  %1725 = vmatprep.subr.mxu0 %v844_v29  ;;  %v1199_v59 = vld [vmem:[#allocation16 + $0x30] sm:$0xff] }
 0x11d   : > { %1762 = vmatprep.subr.mxu1 %v976_v60  ;;  %1726 = vmatpush3.msra.mxu0 %v844_v29 }
 0x11e   : > { %1763 = vmatpush3.msra.mxu1 %v976_v60  ;;  %1727 = vmatprep.subr.mxu0 %v843_v31  ;;  %v1198_v60 = vld [vmem:[#allocation16 + $0x28] sm:$0xff] }
 0x11f   : > { %1764 = vmatprep.subr.mxu1 %v975_v61  ;;  %1728 = vmatpush3.msra.mxu0 %v843_v31 }
 0x120   : > { %1765 = vmatpush3.msra.mxu1 %v975_v61  ;;  %1729 = vmatprep.subr.mxu0 %v842_v32  ;;  %v1197_v61 = vld [vmem:[#allocation16 + $0x20] sm:$0xff] }
 0x121   : > { %1730 = vmatpush3.msra.mxu0 %v842_v32  ;;  %1804 = vmatprep.subr.mxu1 %v1208_v50 }
 0x122   : > { %1769 = vmatprep.subr.mxu0 %v1115_v34 }
 0x1bf   : > { %v736_v1 = vpop.f32.mrf.mxu0 }
 0x1c0   : > { %v737_v2 = vadd.f32 %v1509_v0, %v736_v1 }
 0x1c1   : > { %v1663_v3 = vpop.f32.mrf.mxu0  ;;  %v1698_v4 = vpop.f32.mrf.mxu1 }
 0x1c2   : > { %v947_v6 = vrot.slane %v737_v2, %v2706_v33  ;;  %v837_v14 = vadd.f32 %v1698_v4, %v1510_v5 }
 0x1c3   : > { %v831_v8 = vpop.f32.mrf.mxu1 }
 0x1c4   : > { %v948_v9 = vcombine.high %v947_v6, %v947_v6  ;;  %v955_v10 = vrot.slane %v947_v6, %v2706_v33  ;;  %v832_v11 = vadd.f32 %v1510_v5, %v831_v8 }
 0x1c6   : > { %v962_v12 = vrot.slane %v948_v9, %v2706_v33  ;;  %v966_v13 = vrot.slane %v955_v10, %v965_v7  ;;  %v841_v33 = vld [vmem:[%s546_s7 + $0x8] sm:$0xff]  ;;  %s1294_s7 = scalar_lea.sflag [#allocation4], %s2657_s13 }
 0x1c7   : > { %1732 = vmatmul.mubr.f32.vlgmr.msra.gmra.mxu0 %v841_v33 }
 0x1c8   : > { %v970_v15 = vrot.slane %v962_v12, %v965_v7  ;;  %v973_v16 = vmul.f32 %v966_v13, %v832_v11  ;;  %1770 = vmatpush3.msra.mxu0 %v1115_v34 }
 0x1c9   : > { %1771 = vmatprep.subr.mxu0 %v1114_v35 }
 0x1ca   : > { %v974_v17 = vmul.f32 %v970_v15, %v837_v14  ;;  %1766 = vmatprep.mubr.f32.mxu1 %v973_v16  ;;  %1772 = vmatpush3.msra.mxu0 %v1114_v35  ;;  %v1195_v35 = vld [vmem:[#allocation16 + $0x10] sm:$0xff] }
 0x1cb   : > { %1773 = vmatprep.subr.mxu0 %v1113_v36 }
 0x1cc   : > { %1767 = vmatmul.mubr.f32.vlgmr.msra.gmra.mxu1 %v974_v17  ;;  %1774 = vmatpush3.msra.mxu0 %v1113_v36  ;;  %v1194_v36 = vld [vmem:[#allocation16 + $0x8] sm:$0xff] }
 0x1cd   : > { %1775 = vmatprep.subr.mxu0 %v1112_v37  ;;  %1805 = vmatpush3.msra.mxu1 %v1208_v50 }
 0x1ce   : > { %1776 = vmatpush3.msra.mxu0 %v1112_v37  ;;  %1806 = vmatprep.subr.mxu1 %v1207_v51  ;;  %v1193_v37 = vld [vmem:[#allocation16] sm:$0xff] }
 0x1cf   : > { %1777 = vmatprep.subr.mxu0 %v1111_v38  ;;  %1807 = vmatpush3.msra.mxu1 %v1207_v51 }
 0x1d0   : > { %1778 = vmatpush3.msra.mxu0 %v1111_v38  ;;  %1808 = vmatprep.subr.mxu1 %v1206_v52 }
 0x1d1   : > { %1779 = vmatprep.subr.mxu0 %v1110_v39  ;;  %1809 = vmatpush3.msra.mxu1 %v1206_v52 }
 0x1d2   : > { %1780 = vmatpush3.msra.mxu0 %v1110_v39  ;;  %1810 = vmatprep.subr.mxu1 %v1205_v53  ;;  %v1511_v39 = vld [vmem:[%s2872_s10] ss:$0 sm:$0xff] }
 0x1d3   : > { %1781 = vmatprep.subr.mxu0 %v1109_v40  ;;  %1811 = vmatpush3.msra.mxu1 %v1205_v53 }
 0x1d4   : > { %1782 = vmatpush3.msra.mxu0 %v1109_v40  ;;  %1812 = vmatprep.subr.mxu1 %v1204_v54 }
 0x1d5   : > { %1783 = vmatprep.subr.mxu0 %v1108_v41  ;;  %1813 = vmatpush3.msra.mxu1 %v1204_v54 }
 0x1d6   : > { %1784 = vmatpush3.msra.mxu0 %v1108_v41  ;;  %1814 = vmatprep.subr.mxu1 %v1203_v55 }
 0x1d7   : > { %1785 = vmatprep.subr.mxu0 %v1107_v42  ;;  %1815 = vmatpush3.msra.mxu1 %v1203_v55 }
 0x1d8   : > { %1786 = vmatpush3.msra.mxu0 %v1107_v42  ;;  %1816 = vmatprep.subr.mxu1 %v1202_v56 }
 0x1d9   : > { %1787 = vmatprep.subr.mxu0 %v1106_v43  ;;  %1817 = vmatpush3.msra.mxu1 %v1202_v56 }
 0x1da   : > { %1788 = vmatpush3.msra.mxu0 %v1106_v43  ;;  %1818 = vmatprep.subr.mxu1 %v1201_v57 }
 0x1db   : > { %1789 = vmatprep.subr.mxu0 %v1105_v44  ;;  %1819 = vmatpush3.msra.mxu1 %v1201_v57 }
 0x1dc   : > { %1790 = vmatpush3.msra.mxu0 %v1105_v44  ;;  %1820 = vmatprep.subr.mxu1 %v1200_v58 }
 0x1dd   : > { %1791 = vmatprep.subr.mxu0 %v1104_v45  ;;  %1821 = vmatpush3.msra.mxu1 %v1200_v58 }
 0x1de   : > { %1792 = vmatpush3.msra.mxu0 %v1104_v45  ;;  %1822 = vmatprep.subr.mxu1 %v1199_v59 }
 0x1df   : > { %1793 = vmatprep.subr.mxu0 %v1103_v46  ;;  %1823 = vmatpush3.msra.mxu1 %v1199_v59 }
 0x1e0   : > { %1794 = vmatpush3.msra.mxu0 %v1103_v46  ;;  %1824 = vmatprep.subr.mxu1 %v1198_v60 }
 0x1e1   : > { %1795 = vmatprep.subr.mxu0 %v1102_v47  ;;  %1825 = vmatpush3.msra.mxu1 %v1198_v60 }
 0x1e2   : > { %1796 = vmatpush3.msra.mxu0 %v1102_v47  ;;  %1826 = vmatprep.subr.mxu1 %v1197_v61  ;;  %v1512_v47 = vld [vmem:[%s2873_s12] ss:$0 sm:$0xff] }
 0x1e3   : > { %1797 = vmatprep.subr.mxu0 %v1101_v48  ;;  %1827 = vmatpush3.msra.mxu1 %v1197_v61 }
 0x1e4   : > { %1798 = vmatpush3.msra.mxu0 %v1101_v48  ;;  %1828 = vmatprep.subr.mxu1 %v1196_v62 }
 0x1e5   : > { %1799 = vmatprep.subr.mxu0 %v1100_v49  ;;  %1829 = vmatpush3.msra.mxu1 %v1196_v62 }
 0x1e6   : > { %1800 = vmatpush3.msra.mxu0 %v1100_v49  ;;  %1830 = vmatprep.subr.mxu1 %v1195_v35 }
 0x1e7   : > { %1831 = vmatpush3.msra.mxu1 %v1195_v35 }
 0x1e8   : > { %1832 = vmatprep.subr.mxu1 %v1194_v36 }
 0x1e9   : > { %1833 = vmatpush3.msra.mxu1 %v1194_v36 }
 0x1ea   : > { %1834 = vmatprep.subr.mxu1 %v1193_v37 }
 0x1eb   : > { %1835 = vmatpush3.msra.mxu1 %v1193_v37 }
 0x287   : > { %v1733_v38 = vpop.f32.mrf.mxu0 }
 0x288   : > { %v937_v43 = vadd.f32 %v1733_v38, %v1511_v39 }
 0x289   : > { %v931_v40 = vpop.f32.mrf.mxu0 }
 0x28a   : > { %v932_v42 = vadd.f32 %v1511_v39, %v931_v40 }
 0x28c   : > { %v1768_v63 = vpop.f32.mrf.mxu1 }
 0x28d   : > { %v1072_v0 = vrot.slane %v1768_v63, 4 }
 0x28e   : > { %v1057_v1 = vpop.f32.mrf.mxu1 }
 0x28f   : > { %v1073_v2 = vmax.f32 %v1768_v63, %v1072_v0  ;;  %v1066_v3 = vrot.slane %v1057_v1, 4 }
 0x291   : > { %v1074_v4 = vrot.slane %v1073_v2, 2  ;;  %v1067_v5 = vmax.f32 %v1057_v1, %v1066_v3 }
 0x293   : > { %v1075_v6 = vmax.f32 %v1073_v2, %v1074_v4  ;;  %v1068_v7 = vrot.slane %v1067_v5, 2 }
 0x295   : > { %v1076_v8 = vrot.slane %v1075_v6, 1  ;;  %v1069_v9 = vmax.f32 %v1067_v5, %v1068_v7 }
 0x297   : > { %v1077_v10 = vmax.f32 %v1075_v6, %v1076_v8  ;;  %v1070_v11 = vrot.slane %v1069_v9, 1 }
 0x299   : > { %v1079_v12 = vsub.f32 %v1768_v63, %v1077_v10  ;;  %v1071_v13 = vmax.f32 %v1069_v9, %v1070_v11 }
 0x29b   : > { %v1082_v14 = vmul.f32 1.442695, %v1079_v12  ;;  %v1078_v15 = vsub.f32 %v1057_v1, %v1071_v13 }
 0x29d   : > { %1965 = vpow2.f32 %v1082_v14  ;;  %v1080_v16 = vmul.f32 1.442695, %v1078_v15 }
 0x29f   : > { %1967 = vpow2.f32 %v1080_v16 }
 0x2aa   : > { %v1966_v17 = vpop.eup %1965 }
 0x2ab   : > { %v1090_v18 = vrot.slane %v1966_v17, 4 }
 0x2ac   : > { %v1968_v19 = vpop.eup %1967 }
 0x2ad   : > { %v1084_v20 = vrot.slane %v1968_v19, 4  ;;  %v1091_v21 = vadd.f32 %v1966_v17, %v1090_v18 }
 0x2af   : > { %v1085_v22 = vadd.f32 %v1968_v19, %v1084_v20  ;;  %v1092_v23 = vrot.slane %v1091_v21, 2 }
 0x2b1   : > { %v1086_v24 = vrot.slane %v1085_v22, 2  ;;  %v1093_v25 = vadd.f32 %v1092_v23, %v1091_v21 }
 0x2b3   : > { %v1087_v26 = vadd.f32 %v1086_v24, %v1085_v22  ;;  %v1094_v27 = vrot.slane %v1093_v25, 1 }
 0x2b5   : > { %v1088_v28 = vrot.slane %v1087_v26, 1  ;;  %v1095_v29 = vadd.f32 %v1094_v27, %v1093_v25 }
 0x2b7   : > { %v1089_v30 = vadd.f32 %v1088_v28, %v1087_v26  ;;  %1969 = vrcp.f32 %v1095_v29 }
 0x2b9   : > { %1971 = vrcp.f32 %v1089_v30 }
 0x2c4   : > { %v1970_v31 = vpop.eup %1969 }
 0x2c5   : > { %v1099_v34 = vmul.f32 %v1970_v31, %v1966_v17 }
 0x2c6   : > { %v1972_v32 = vpop.eup %1971 }
 0x2c7   : > { %v1098_v33 = vmul.f32 %v1972_v32, %v1968_v19 }
 0x2c9   : > { %1801 = vmatprep.mubr.f32.mxu0 %v1098_v33 }
 0x2ca   : > { %1802 = vmatmul.mubr.f32.vlgmr.msra.gmra.mxu0 %v1099_v34 }
 0x38a   : > { %v1803_v41 = vpop.f32.mrf.mxu0 }
 0x38b   : > { %v1192_v46 = vmul.f32 %v1803_v41, %v937_v43 }
 0x38c   : > { %v1182_v44 = vpop.f32.mrf.mxu0 }
 0x38d   : > { %v1191_v45 = vmul.f32 %v1182_v44, %v932_v42 }
 0x38f   : > { %1836 = vmatprep.mubr.f32.mxu1 %v1191_v45 }
 0x390   : > { %1837 = vmatmul.mubr.f32.vlgmr.msra.gmra.mxu1 %v1192_v46 }
 0x450   : > { %v1838_v48 = vpop.f32.mrf.mxu1 }
 0x451   : > { %v1288_v49 = vadd.f32 %v1838_v48, %v1512_v47 }
 0x452   : > { %v1282_v50 = vpop.f32.mrf.mxu1 }
 0x453   : > { %1292 = vst [vmem:[%s622_s14 + $0x8] sm:$0xff] %v1288_v49  ;;  %v1283_v51 = vadd.f32 %v1512_v47, %v1282_v50 }
 0x455   : > { %1291 = vst [vmem:[%s622_s14] sm:$0xff] %v1283_v51 }
 0x456   : > { %2226 = shalt.err (!%p2223_p8)
}
 0x457   : > { %s2227_s18 = scalar_lea.hbm %s2746_s3, 256  ;;  %s2231_s25 = scalar_lea.hbm %s2875_s30, 512 }
 0x458   : > { %p2228_p12 = scmp.ne.s32.totalorder %s2746_s3, %s2227_s18  ;;  %p2232_p2 = scmp.lt.s32.totalorder %s2746_s3, %s2875_s30 }
 0x459   : > { %p2233_p10 = scmp.lt.s32.totalorder %s2231_s25, %s2227_s18 }
 0x45a   : > { %p2229_p9 = pnand %p2228_p12, %p2876_p1 }
 0x45b   : > { %p2234_p4 = por %p2233_p10, %p2232_p2 }
 0x45c   : > { %p2230_p0 = pneg %p2229_p9 }
 0x45e   : > { %p2235_p13 = pnand %p2234_p4, %p2230_p0 }
 0x460   : > { %2238 = shalt.err (!%p2235_p13)
}
 0x461   : > { %s2312_s10 = smov 128   ;;  %s2313_s19 = smov 8  }
 0x462   : > { %1869 = dma.vmem_to_hbm [thread:$0]  (%p2876_p1), %s2741_s21, 256, %s2746_s3, %s1294_s7, %s2312_s10, %s2312_s10, %s2313_s19  }
 0x463 PF: > { %s2877_s23 = sld [smem:[#allocation24_spill]]  ;;  %p2880_p6 = scmp.ge.s32.totalorder %s2293_s28, 2 }
 0x464   : > { %s2878_s12 = sld [smem:[#allocation30_spill]] }
 0x469   : > { %s1322_s14 = sand.u32 1, %s2877_s23  }
 0x46a   : > { %p2879_p3 = scmp.ne.s32.totalorder %s2878_s12, 0  ;;  %s1323_s17 = scalar_lea.sflag [#allocation4], %s1322_s14 }
 0x46c   : > { %p1901_p7 = pnand %p2880_p6, %p2879_p3 }
 0x46e   : > { %p1902_p5 = pneg %p1901_p7 }
 0x470   : > { %2276 = dma.done.wait (%p1902_p5), %s1323_s17, 256  }
 0x471   : > { %2278 = vsyncadd (%p1902_p5), %s1323_s17, 4294967040  ;;  %s2881_s28 = sld [smem:[#allocation27_spill]]  ;;  %s2884_s25 = smov %s2285_s26 }
 0x472   : > { %s2882_s22 = sld [smem:[#allocation25_spill]] }
 0x473   : > { %s2883_s27 = sld [smem:[#allocation28_spill]] }
 0x477   : > { %p32_p11 = scmp.ge.s32.totalorder %s2881_s28, 4  }
 0x478   : > { %s2885_s26 = smov %s2882_s22 }
 0x479   :  { %34 = sbr.rel (!%p32_p11) target bundleno = 20 (0x14), region = 165 }
 0x47e   :  { %1328 = vsyncpa [#allocation3], 1 }
 0x47f   :  { %1330 = vsyncpa [#allocation3 + $0x1], 1 }
 0x480   :  { %1331 = vsyncpa [#allocation6], 1 }
 0x481   :  { %1333 = vsyncpa [#allocation6 + $0x1], 1 }
 0x482   :  { %1334 = vsyncpa [#allocation9], 1 }
 0x483   :  { %1335 = vsyncpa [#allocation12], 1 }
 0x484   :  { %1336 = vsyncpa [#allocation15], 1 }
 0x485   :  { %1337 = vsyncpa [#allocation4], 1 }
 0x486   :  { %1339 = vsyncpa [#allocation4 + $0x1], 1 }

</bundles_post_ra>
